<compile_context>
chip_gen: v6e
topology: v6e:2x2x1
jax: 0.10.0
libtpu: 0.0.40
codegen_flags: <defaults>
</compile_context>

<pallas_src>
import jax
import jax.numpy as jnp
from jax.experimental import pallas as pl
from jax.experimental.pallas import tpu as pltpu

# Small, shape-consistent config
B = 2      # batch
T = 8      # sequence length
V = 50     # vocab size
E = 32     # embedding dim
H = 32     # LSTM hidden size
C = 5      # number of tags (linear head output)


# ----------------------------------------------------------------------------
# Pallas kernel: fused input projection + unidirectional LSTM recurrence.
# ----------------------------------------------------------------------------
def lstm_recurrence_kernel(embed_ref, len_ref, w_ih_ref, w_hh_ref, b_ref,
                           hout_ref):
    """embed_ref : (T*Bt, E)  bf16  time-major embeddings for this batch tile
       len_ref   : (Bt, 1)    i32   sequence lengths
       w_ih_ref  : (E, 4H)    bf16  input->gates, PyTorch gate order [i,f,g,o]
       w_hh_ref  : (H, 4H)    f32   hidden->gates, PyTorch gate order [i,f,g,o]
       b_ref     : (1, 4H)    f32   b_ih + b_hh
       hout_ref  : (Bt, T*H)  f32   hidden states, lane-dense, zero past length
    """
    TB, _ = embed_ref.shape
    Bt = len_ref.shape[0]
    T_ = TB // Bt
    H4 = w_hh_ref.shape[1]
    Hh = H4 // 4

    # ---- input projection hoisted out of the recurrence: one big matmul ----
    gx = jnp.dot(embed_ref[...], w_ih_ref[...],
                 preferred_element_type=jnp.float32)          # (T*Bt, 4H) f32
    gx = gx + b_ref[...]                                      # fused bias

    w_hh = w_hh_ref[...]                                      # (H, 4H) f32

    # ---- loop-invariant: lengths broadcast once to the full lane width -----
    len_b = jnp.broadcast_to(len_ref[...], (Bt, Hh))          # (Bt, H) i32

    # ---- recurrence: h/c live in vregs, fully unrolled static time loop ----
    h = jnp.zeros((Bt, Hh), jnp.float32)
    c = jnp.zeros((Bt, Hh), jnp.float32)
    zeros_h = jnp.zeros((Bt, Hh), jnp.float32)

    outs = []
    for t in range(T_):
        # static per-step row window (t, Bt are Python ints -> no dyn slice)
        gates = gx[t * Bt:(t + 1) * Bt] + jnp.dot(
            h, w_hh, preferred_element_type=jnp.float32)      # (Bt, 4H) f32

        # slice directly into the four 32-lane gate windows (PyTorch order)
        i_g = jax.nn.sigmoid(gates[:, 0 * Hh:1 * Hh])
        f_g = jax.nn.sigmoid(gates[:, 1 * Hh:2 * Hh])
        g_g = jnp.tanh(gates[:, 2 * Hh:3 * Hh])
        o_g = jax.nn.sigmoid(gates[:, 3 * Hh:4 * Hh])

        c_new = f_g * c + i_g * g_g
        h_new = o_g * jnp.tanh(c_new)

        valid = len_b > t                                     # 1 VPU compare
        # pack_padded_sequence: state frozen past each sequence length
        h = jnp.where(valid, h_new, h)
        c = jnp.where(valid, c_new, c)
        # pad_packed_sequence: rnn outputs past length are zero
        outs.append(jnp.where(valid, h_new, zeros_h))

    # ---- single lane-dense (Bt, T*H) store (256 lanes) ----------------------
    hout_ref[...] = jnp.concatenate(outs, axis=1)


# ----------------------------------------------------------------------------
# Parameter handling (PyTorch layouts -> kernel layouts)
# ----------------------------------------------------------------------------
def init_params(key):
    """PyTorch-layout parameters (gate order i, f, g, o)."""
    ks = jax.random.split(key, 8)
    s = 0.1
    return {
        "emb_table": s * jax.random.normal(ks[0], (V, E), jnp.float32),
        "w_ih":      s * jax.random.normal(ks[1], (4 * H, E), jnp.float32),
        "w_hh":      s * jax.random.normal(ks[2], (4 * H, H), jnp.float32),
        "b_ih":      s * jax.random.normal(ks[3], (4 * H,), jnp.float32),
        "b_hh":      s * jax.random.normal(ks[4], (4 * H,), jnp.float32),
        "w_head":    s * jax.random.normal(ks[5], (C, H), jnp.float32),
        "b_head":    s * jax.random.normal(ks[6], (C,), jnp.float32),
    }


def prepare_kernel_params(params):
    """Transpose PyTorch weights into matmul layout. Gate order is kept as
    PyTorch's [i, f, g, o]. W_ih (one-shot projection) goes bf16 for the MXU;
    W_hh stays f32 so the serial recurrence does not accumulate rounding."""
    return {
        "w_ih_t": params["w_ih"].T.astype(jnp.bfloat16),              # (E, 4H)
        "w_hh_t": params["w_hh"].T.astype(jnp.float32),               # (H, 4H)
        "b_gates": (params["b_ih"] + params["b_hh"])[None, :],        # (1, 4H)
        "w_head_t": params["w_head"].T,                               # (H, C)
        "b_head": params["b_head"][None, :],                          # (1, C)
    }


# ----------------------------------------------------------------------------
# Forward pass
# ----------------------------------------------------------------------------
@jax.jit
def bert_embedding_lstm_forward(x, x_length, params):
    """x: (B, T) int32 token ids; x_length: (B,) int32. Returns (B, T, C) f32."""
    kp = prepare_kernel_params(params)
    B_, T_ = x.shape

    # Batch tiling: at production shapes pick b_tile as a multiple of 8
    # (>=128 rows on v5e, >=256 on v6e/v7x; re-derive VMEM budget for v7x's
    # 64 MiB — the live (T*Bt, 4H) gx value is the dominant per-row term),
    # pad the batch to nb*b_tile and rely on length-0 masking for pad rows.
    # At this toy shape the whole batch is one tile (grid of 1).
    b_tile = B_
    nb = B_ // b_tile

    # Gather directly into (tile, time, batch) order by transposing only the
    # tiny (nb, b_tile, T) index array — no full-tensor transpose of (B,T,E).
    x_tiled = x.reshape(nb, b_tile, T_).transpose(0, 2, 1)          # (nb, T, Bt)
    embed = params["emb_table"][x_tiled].astype(jnp.bfloat16)       # (nb, T, Bt, E)
    embed2d = embed.reshape(nb * T_ * b_tile, E)                    # free view

    len2d = x_length.astype(jnp.int32).reshape(B_, 1)               # (B, 1)

    hout = pl.pallas_call(
        lstm_recurrence_kernel,
        out_shape=jax.ShapeDtypeStruct((B_, T_ * H), jnp.float32),
        grid_spec=pltpu.PrefetchScalarGridSpec(
            num_scalar_prefetch=0,
            grid=(nb,),
            in_specs=[
                pl.BlockSpec((T_ * b_tile, E), lambda b: (b, 0)),   # embeddings
                pl.BlockSpec((b_tile, 1), lambda b: (b, 0)),        # lengths
                pl.BlockSpec((E, 4 * H), lambda b: (0, 0)),         # W_ih
                pl.BlockSpec((H, 4 * H), lambda b: (0, 0)),         # W_hh
                pl.BlockSpec((1, 4 * H), lambda b: (0, 0)),         # bias
            ],
            out_specs=pl.BlockSpec((b_tile, T_ * H), lambda b: (b, 0)),
        ),
        compiler_params=pltpu.CompilerParams(
            dimension_semantics=("parallel",)),
    )(embed2d, len2d, kp["w_ih_t"], kp["w_hh_t"], kp["b_gates"])

    # (B, T*H) is already batch-major contiguous: free view to (B, T, H),
    # then the tiny linear head (C=5) runs as one XLA matmul — no transpose.
    rnn_out = hout.reshape(B_, T_, H)
    logits = rnn_out @ kp["w_head_t"] + kp["b_head"]                # (B, T, C)
    return logits


# ----------------------------------------------------------------------------
# Pure-JAX reference (PyTorch gate order, f32) for a correctness check.
# ----------------------------------------------------------------------------
def reference_forward(x, x_length, params):
    embed = params["emb_table"][x]                                  # (B, T, E)
    B_, T_ = x.shape
    h = jnp.zeros((B_, H), jnp.float32)
    c = jnp.zeros((B_, H), jnp.float32)
    bias = params["b_ih"] + params["b_hh"]
    outs = []
    for t in range(T_):
        xt = embed[:, t, :]
        gates = xt @ params["w_ih"].T + h @ params["w_hh"].T + bias
        i_g = jax.nn.sigmoid(gates[:, 0 * H:1 * H])
        f_g = jax.nn.sigmoid(gates[:, 1 * H:2 * H])
        g_g = jnp.tanh(gates[:, 2 * H:3 * H])
        o_g = jax.nn.sigmoid(gates[:, 3 * H:4 * H])
        c_new = f_g * c + i_g * g_g
        h_new = o_g * jnp.tanh(c_new)
        valid = (t < x_length)[:, None]
        h = jnp.where(valid, h_new, h)
        c = jnp.where(valid, c_new, c)
        outs.append(jnp.where(valid, h_new, jnp.zeros_like(h_new)))
    rnn = jnp.stack(outs, axis=1)                                   # (B, T, H)
    return rnn @ params["w_head"].T + params["b_head"][None, None, :]


if __name__ == "__main__":
    key = jax.random.PRNGKey(0)
    k_param, k_tok = jax.random.split(key)
    params = init_params(k_param)

    x = jax.random.randint(k_tok, (B, T), 0, V, dtype=jnp.int32)    # token ids
    x_length = jnp.array([T, T - 3], dtype=jnp.int32)               # variable lengths

    logits = bert_embedding_lstm_forward(x, x_length, params)
    logits = jax.block_until_ready(logits)

    assert logits.shape == (B, T, C), logits.shape
    assert logits.dtype == jnp.float32

    ref = reference_forward(x, x_length, params)
    max_err = float(jnp.max(jnp.abs(logits - ref)))
    assert max_err < 1e-2, f"mismatch vs reference: {max_err}"

    print("KERNEL_OK")
</pallas_src>

<mosaic_0001>
module attributes {stable_mosaic.version = 11 : i64} {
  func.func @lstm_recurrence_kernel(%arg0: i32, %arg1: memref<16x32xbf16, #tpu.memory_space<vmem>>, %arg2: memref<2x1xi32, #tpu.memory_space<vmem>>, %arg3: memref<32x128xbf16, #tpu.memory_space<vmem>>, %arg4: memref<32x128xf32, #tpu.memory_space<vmem>>, %arg5: memref<1x128xf32, #tpu.memory_space<vmem>>, %arg6: memref<2x256xf32, #tpu.memory_space<vmem>>) attributes {dimension_semantics = [#tpu.dimension_semantics<parallel>], iteration_bounds = array<i64: 1>, scalar_prefetch = 0 : i64, scratch_operands = 0 : i64, tpu.core_type = #tpu.core_type<tc>, window_params = [{transform_indices = @transform_0, window_bounds = array<i64: 16, 32>}, {transform_indices = @transform_1, window_bounds = array<i64: 2, 1>}, {pipeline_mode = #tpu.pipeline_mode<synchronous>, transform_indices = @transform_2, window_bounds = array<i64: 32, 128>}, {pipeline_mode = #tpu.pipeline_mode<synchronous>, transform_indices = @transform_3, window_bounds = array<i64: 32, 128>}, {pipeline_mode = #tpu.pipeline_mode<synchronous>, transform_indices = @transform_4, window_bounds = array<i64: 1, 128>}, {transform_indices = @transform_5, window_bounds = array<i64: 2, 256>}]} {
    %c0 = arith.constant 0 : index
    %c0_0 = arith.constant 0 : index
    %0 = vector.load %arg1[%c0, %c0_0] : memref<16x32xbf16, #tpu.memory_space<vmem>>, vector<16x32xbf16>
    %c0_1 = arith.constant 0 : index
    %c0_2 = arith.constant 0 : index
    %1 = vector.load %arg3[%c0_1, %c0_2] : memref<32x128xbf16, #tpu.memory_space<vmem>>, vector<32x128xbf16>
    %cst = arith.constant dense<0.000000e+00> : vector<16x128xf32>
    %2 = tpu.matmul %0, %1, %cst {dimension_numbers = #tpu.dot_dimension_numbers<[1], [0], [0], [1], [0, 0, 1, 1], [], []>} : vector<16x32xbf16>, vector<32x128xbf16>, vector<16x128xf32> -> vector<16x128xf32>
    %c0_3 = arith.constant 0 : index
    %c0_4 = arith.constant 0 : index
    %3 = vector.load %arg5[%c0_3, %c0_4] : memref<1x128xf32, #tpu.memory_space<vmem>>, vector<1x128xf32>
    %4 = vector.broadcast %3 : vector<1x128xf32> to vector<16x128xf32>
    %5 = arith.addf %2, %4 : vector<16x128xf32>
    %c0_5 = arith.constant 0 : index
    %c0_6 = arith.constant 0 : index
    %6 = vector.load %arg4[%c0_5, %c0_6] : memref<32x128xf32, #tpu.memory_space<vmem>>, vector<32x128xf32>
    %c0_7 = arith.constant 0 : index
    %c0_8 = arith.constant 0 : index
    %7 = vector.load %arg2[%c0_7, %c0_8] : memref<2x1xi32, #tpu.memory_space<vmem>>, vector<2x1xi32>
    %8 = vector.shape_cast %7 : vector<2x1xi32> to vector<2x1xi32>
    %9 = vector.broadcast %8 : vector<2x1xi32> to vector<2x32xi32>
    %cst_9 = arith.constant 0.000000e+00 : f32
    %10 = vector.broadcast %cst_9 : f32 to vector<2x32xf32>
    %cst_10 = arith.constant 0.000000e+00 : f32
    %11 = vector.broadcast %cst_10 : f32 to vector<2x32xf32>
    %cst_11 = arith.constant 0.000000e+00 : f32
    %12 = vector.broadcast %cst_11 : f32 to vector<2x32xf32>
    %13 = vector.extract_strided_slice %5 {offsets = [0, 0], sizes = [2, 128], strides = [1, 1]} : vector<16x128xf32> to vector<2x128xf32>
    %cst_12 = arith.constant dense<0.000000e+00> : vector<2x128xf32>
    %14 = tpu.matmul %10, %6, %cst_12 {dimension_numbers = #tpu.dot_dimension_numbers<[1], [0], [0], [1], [0, 0, 1, 1], [], []>} : vector<2x32xf32>, vector<32x128xf32>, vector<2x128xf32> -> vector<2x128xf32>
    %15 = arith.addf %13, %14 : vector<2x128xf32>
    %16 = vector.extract_strided_slice %15 {offsets = [0, 0], sizes = [2, 32], strides = [1, 1]} : vector<2x128xf32> to vector<2x32xf32>
    %17 = arith.negf %16 : vector<2x32xf32>
    %18 = math.exp %17 : vector<2x32xf32>
    %cst_13 = arith.constant 1.000000e+00 : f32
    %19 = vector.broadcast %cst_13 : f32 to vector<2x32xf32>
    %20 = arith.addf %19, %18 : vector<2x32xf32>
    %21 = arith.divf %19, %20 : vector<2x32xf32>
    %22 = vector.extract_strided_slice %15 {offsets = [0, 32], sizes = [2, 32], strides = [1, 1]} : vector<2x128xf32> to vector<2x32xf32>
    %23 = arith.negf %22 : vector<2x32xf32>
    %24 = math.exp %23 : vector<2x32xf32>
    %cst_14 = arith.constant 1.000000e+00 : f32
    %25 = vector.broadcast %cst_14 : f32 to vector<2x32xf32>
    %26 = arith.addf %25, %24 : vector<2x32xf32>
    %27 = arith.divf %25, %26 : vector<2x32xf32>
    %28 = vector.extract_strided_slice %15 {offsets = [0, 64], sizes = [2, 32], strides = [1, 1]} : vector<2x128xf32> to vector<2x32xf32>
    %29 = math.tanh %28 : vector<2x32xf32>
    %30 = vector.extract_strided_slice %15 {offsets = [0, 96], sizes = [2, 32], strides = [1, 1]} : vector<2x128xf32> to vector<2x32xf32>
    %31 = arith.negf %30 : vector<2x32xf32>
    %32 = math.exp %31 : vector<2x32xf32>
    %cst_15 = arith.constant 1.000000e+00 : f32
    %33 = vector.broadcast %cst_15 : f32 to vector<2x32xf32>
    %34 = arith.addf %33, %32 : vector<2x32xf32>
    %35 = arith.divf %33, %34 : vector<2x32xf32>
    %36 = arith.mulf %27, %11 : vector<2x32xf32>
    %37 = arith.mulf %21, %29 : vector<2x32xf32>
    %38 = arith.addf %36, %37 : vector<2x32xf32>
    %39 = math.tanh %38 : vector<2x32xf32>
    %40 = arith.mulf %35, %39 : vector<2x32xf32>
    %c0_i32 = arith.constant 0 : i32
    %41 = vector.broadcast %c0_i32 : i32 to vector<2x32xi32>
    %42 = arith.cmpi sgt, %9, %41 : vector<2x32xi32>
    %43 = arith.select %42, %40, %10 : vector<2x32xi1>, vector<2x32xf32>
    %44 = arith.select %42, %38, %11 : vector<2x32xi1>, vector<2x32xf32>
    %45 = arith.select %42, %40, %12 : vector<2x32xi1>, vector<2x32xf32>
    %46 = vector.extract_strided_slice %5 {offsets = [2, 0], sizes = [2, 128], strides = [1, 1]} : vector<16x128xf32> to vector<2x128xf32>
    %cst_16 = arith.constant dense<0.000000e+00> : vector<2x128xf32>
    %47 = tpu.matmul %43, %6, %cst_16 {dimension_numbers = #tpu.dot_dimension_numbers<[1], [0], [0], [1], [0, 0, 1, 1], [], []>} : vector<2x32xf32>, vector<32x128xf32>, vector<2x128xf32> -> vector<2x128xf32>
    %48 = arith.addf %46, %47 : vector<2x128xf32>
    %49 = vector.extract_strided_slice %48 {offsets = [0, 0], sizes = [2, 32], strides = [1, 1]} : vector<2x128xf32> to vector<2x32xf32>
    %50 = arith.negf %49 : vector<2x32xf32>
    %51 = math.exp %50 : vector<2x32xf32>
    %cst_17 = arith.constant 1.000000e+00 : f32
    %52 = vector.broadcast %cst_17 : f32 to vector<2x32xf32>
    %53 = arith.addf %52, %51 : vector<2x32xf32>
    %54 = arith.divf %52, %53 : vector<2x32xf32>
    %55 = vector.extract_strided_slice %48 {offsets = [0, 32], sizes = [2, 32], strides = [1, 1]} : vector<2x128xf32> to vector<2x32xf32>
    %56 = arith.negf %55 : vector<2x32xf32>
    %57 = math.exp %56 : vector<2x32xf32>
    %cst_18 = arith.constant 1.000000e+00 : f32
    %58 = vector.broadcast %cst_18 : f32 to vector<2x32xf32>
    %59 = arith.addf %58, %57 : vector<2x32xf32>
    %60 = arith.divf %58, %59 : vector<2x32xf32>
    %61 = vector.extract_strided_slice %48 {offsets = [0, 64], sizes = [2, 32], strides = [1, 1]} : vector<2x128xf32> to vector<2x32xf32>
    %62 = math.tanh %61 : vector<2x32xf32>
    %63 = vector.extract_strided_slice %48 {offsets = [0, 96], sizes = [2, 32], strides = [1, 1]} : vector<2x128xf32> to vector<2x32xf32>
    %64 = arith.negf %63 : vector<2x32xf32>
    %65 = math.exp %64 : vector<2x32xf32>
    %cst_19 = arith.constant 1.000000e+00 : f32
    %66 = vector.broadcast %cst_19 : f32 to vector<2x32xf32>
    %67 = arith.addf %66, %65 : vector<2x32xf32>
    %68 = arith.divf %66, %67 : vector<2x32xf32>
    %69 = arith.mulf %60, %44 : vector<2x32xf32>
    %70 = arith.mulf %54, %62 : vector<2x32xf32>
    %71 = arith.addf %69, %70 : vector<2x32xf32>
    %72 = math.tanh %71 : vector<2x32xf32>
    %73 = arith.mulf %68, %72 : vector<2x32xf32>
    %c1_i32 = arith.constant 1 : i32
    %74 = vector.broadcast %c1_i32 : i32 to vector<2x32xi32>
    %75 = arith.cmpi sgt, %9, %74 : vector<2x32xi32>
    %76 = arith.select %75, %73, %43 : vector<2x32xi1>, vector<2x32xf32>
    %77 = arith.select %75, %71, %44 : vector<2x32xi1>, vector<2x32xf32>
    %78 = arith.select %75, %73, %12 : vector<2x32xi1>, vector<2x32xf32>
    %79 = vector.extract_strided_slice %5 {offsets = [4, 0], sizes = [2, 128], strides = [1, 1]} : vector<16x128xf32> to vector<2x128xf32>
    %cst_20 = arith.constant dense<0.000000e+00> : vector<2x128xf32>
    %80 = tpu.matmul %76, %6, %cst_20 {dimension_numbers = #tpu.dot_dimension_numbers<[1], [0], [0], [1], [0, 0, 1, 1], [], []>} : vector<2x32xf32>, vector<32x128xf32>, vector<2x128xf32> -> vector<2x128xf32>
    %81 = arith.addf %79, %80 : vector<2x128xf32>
    %82 = vector.extract_strided_slice %81 {offsets = [0, 0], sizes = [2, 32], strides = [1, 1]} : vector<2x128xf32> to vector<2x32xf32>
    %83 = arith.negf %82 : vector<2x32xf32>
    %84 = math.exp %83 : vector<2x32xf32>
    %cst_21 = arith.constant 1.000000e+00 : f32
    %85 = vector.broadcast %cst_21 : f32 to vector<2x32xf32>
    %86 = arith.addf %85, %84 : vector<2x32xf32>
    %87 = arith.divf %85, %86 : vector<2x32xf32>
    %88 = vector.extract_strided_slice %81 {offsets = [0, 32], sizes = [2, 32], strides = [1, 1]} : vector<2x128xf32> to vector<2x32xf32>
    %89 = arith.negf %88 : vector<2x32xf32>
    %90 = math.exp %89 : vector<2x32xf32>
    %cst_22 = arith.constant 1.000000e+00 : f32
    %91 = vector.broadcast %cst_22 : f32 to vector<2x32xf32>
    %92 = arith.addf %91, %90 : vector<2x32xf32>
    %93 = arith.divf %91, %92 : vector<2x32xf32>
    %94 = vector.extract_strided_slice %81 {offsets = [0, 64], sizes = [2, 32], strides = [1, 1]} : vector<2x128xf32> to vector<2x32xf32>
    %95 = math.tanh %94 : vector<2x32xf32>
    %96 = vector.extract_strided_slice %81 {offsets = [0, 96], sizes = [2, 32], strides = [1, 1]} : vector<2x128xf32> to vector<2x32xf32>
    %97 = arith.negf %96 : vector<2x32xf32>
    %98 = math.exp %97 : vector<2x32xf32>
    %cst_23 = arith.constant 1.000000e+00 : f32
    %99 = vector.broadcast %cst_23 : f32 to vector<2x32xf32>
    %100 = arith.addf %99, %98 : vector<2x32xf32>
    %101 = arith.divf %99, %100 : vector<2x32xf32>
    %102 = arith.mulf %93, %77 : vector<2x32xf32>
    %103 = arith.mulf %87, %95 : vector<2x32xf32>
    %104 = arith.addf %102, %103 : vector<2x32xf32>
    %105 = math.tanh %104 : vector<2x32xf32>
    %106 = arith.mulf %101, %105 : vector<2x32xf32>
    %c2_i32 = arith.constant 2 : i32
    %107 = vector.broadcast %c2_i32 : i32 to vector<2x32xi32>
    %108 = arith.cmpi sgt, %9, %107 : vector<2x32xi32>
    %109 = arith.select %108, %106, %76 : vector<2x32xi1>, vector<2x32xf32>
    %110 = arith.select %108, %104, %77 : vector<2x32xi1>, vector<2x32xf32>
    %111 = arith.select %108, %106, %12 : vector<2x32xi1>, vector<2x32xf32>
    %112 = vector.extract_strided_slice %5 {offsets = [6, 0], sizes = [2, 128], strides = [1, 1]} : vector<16x128xf32> to vector<2x128xf32>
    %cst_24 = arith.constant dense<0.000000e+00> : vector<2x128xf32>
    %113 = tpu.matmul %109, %6, %cst_24 {dimension_numbers = #tpu.dot_dimension_numbers<[1], [0], [0], [1], [0, 0, 1, 1], [], []>} : vector<2x32xf32>, vector<32x128xf32>, vector<2x128xf32> -> vector<2x128xf32>
    %114 = arith.addf %112, %113 : vector<2x128xf32>
    %115 = vector.extract_strided_slice %114 {offsets = [0, 0], sizes = [2, 32], strides = [1, 1]} : vector<2x128xf32> to vector<2x32xf32>
    %116 = arith.negf %115 : vector<2x32xf32>
    %117 = math.exp %116 : vector<2x32xf32>
    %cst_25 = arith.constant 1.000000e+00 : f32
    %118 = vector.broadcast %cst_25 : f32 to vector<2x32xf32>
    %119 = arith.addf %118, %117 : vector<2x32xf32>
    %120 = arith.divf %118, %119 : vector<2x32xf32>
    %121 = vector.extract_strided_slice %114 {offsets = [0, 32], sizes = [2, 32], strides = [1, 1]} : vector<2x128xf32> to vector<2x32xf32>
    %122 = arith.negf %121 : vector<2x32xf32>
    %123 = math.exp %122 : vector<2x32xf32>
    %cst_26 = arith.constant 1.000000e+00 : f32
    %124 = vector.broadcast %cst_26 : f32 to vector<2x32xf32>
    %125 = arith.addf %124, %123 : vector<2x32xf32>
    %126 = arith.divf %124, %125 : vector<2x32xf32>
    %127 = vector.extract_strided_slice %114 {offsets = [0, 64], sizes = [2, 32], strides = [1, 1]} : vector<2x128xf32> to vector<2x32xf32>
    %128 = math.tanh %127 : vector<2x32xf32>
    %129 = vector.extract_strided_slice %114 {offsets = [0, 96], sizes = [2, 32], strides = [1, 1]} : vector<2x128xf32> to vector<2x32xf32>
    %130 = arith.negf %129 : vector<2x32xf32>
    %131 = math.exp %130 : vector<2x32xf32>
    %cst_27 = arith.constant 1.000000e+00 : f32
    %132 = vector.broadcast %cst_27 : f32 to vector<2x32xf32>
    %133 = arith.addf %132, %131 : vector<2x32xf32>
    %134 = arith.divf %132, %133 : vector<2x32xf32>
    %135 = arith.mulf %126, %110 : vector<2x32xf32>
    %136 = arith.mulf %120, %128 : vector<2x32xf32>
    %137 = arith.addf %135, %136 : vector<2x32xf32>
    %138 = math.tanh %137 : vector<2x32xf32>
    %139 = arith.mulf %134, %138 : vector<2x32xf32>
    %c3_i32 = arith.constant 3 : i32
    %140 = vector.broadcast %c3_i32 : i32 to vector<2x32xi32>
    %141 = arith.cmpi sgt, %9, %140 : vector<2x32xi32>
    %142 = arith.select %141, %139, %109 : vector<2x32xi1>, vector<2x32xf32>
    %143 = arith.select %141, %137, %110 : vector<2x32xi1>, vector<2x32xf32>
    %144 = arith.select %141, %139, %12 : vector<2x32xi1>, vector<2x32xf32>
    %145 = vector.extract_strided_slice %5 {offsets = [8, 0], sizes = [2, 128], strides = [1, 1]} : vector<16x128xf32> to vector<2x128xf32>
    %cst_28 = arith.constant dense<0.000000e+00> : vector<2x128xf32>
    %146 = tpu.matmul %142, %6, %cst_28 {dimension_numbers = #tpu.dot_dimension_numbers<[1], [0], [0], [1], [0, 0, 1, 1], [], []>} : vector<2x32xf32>, vector<32x128xf32>, vector<2x128xf32> -> vector<2x128xf32>
    %147 = arith.addf %145, %146 : vector<2x128xf32>
    %148 = vector.extract_strided_slice %147 {offsets = [0, 0], sizes = [2, 32], strides = [1, 1]} : vector<2x128xf32> to vector<2x32xf32>
    %149 = arith.negf %148 : vector<2x32xf32>
    %150 = math.exp %149 : vector<2x32xf32>
    %cst_29 = arith.constant 1.000000e+00 : f32
    %151 = vector.broadcast %cst_29 : f32 to vector<2x32xf32>
    %152 = arith.addf %151, %150 : vector<2x32xf32>
    %153 = arith.divf %151, %152 : vector<2x32xf32>
    %154 = vector.extract_strided_slice %147 {offsets = [0, 32], sizes = [2, 32], strides = [1, 1]} : vector<2x128xf32> to vector<2x32xf32>
    %155 = arith.negf %154 : vector<2x32xf32>
    %156 = math.exp %155 : vector<2x32xf32>
    %cst_30 = arith.constant 1.000000e+00 : f32
    %157 = vector.broadcast %cst_30 : f32 to vector<2x32xf32>
    %158 = arith.addf %157, %156 : vector<2x32xf32>
    %159 = arith.divf %157, %158 : vector<2x32xf32>
    %160 = vector.extract_strided_slice %147 {offsets = [0, 64], sizes = [2, 32], strides = [1, 1]} : vector<2x128xf32> to vector<2x32xf32>
    %161 = math.tanh %160 : vector<2x32xf32>
    %162 = vector.extract_strided_slice %147 {offsets = [0, 96], sizes = [2, 32], strides = [1, 1]} : vector<2x128xf32> to vector<2x32xf32>
    %163 = arith.negf %162 : vector<2x32xf32>
    %164 = math.exp %163 : vector<2x32xf32>
    %cst_31 = arith.constant 1.000000e+00 : f32
    %165 = vector.broadcast %cst_31 : f32 to vector<2x32xf32>
    %166 = arith.addf %165, %164 : vector<2x32xf32>
    %167 = arith.divf %165, %166 : vector<2x32xf32>
    %168 = arith.mulf %159, %143 : vector<2x32xf32>
    %169 = arith.mulf %153, %161 : vector<2x32xf32>
    %170 = arith.addf %168, %169 : vector<2x32xf32>
    %171 = math.tanh %170 : vector<2x32xf32>
    %172 = arith.mulf %167, %171 : vector<2x32xf32>
    %c4_i32 = arith.constant 4 : i32
    %173 = vector.broadcast %c4_i32 : i32 to vector<2x32xi32>
    %174 = arith.cmpi sgt, %9, %173 : vector<2x32xi32>
    %175 = arith.select %174, %172, %142 : vector<2x32xi1>, vector<2x32xf32>
    %176 = arith.select %174, %170, %143 : vector<2x32xi1>, vector<2x32xf32>
    %177 = arith.select %174, %172, %12 : vector<2x32xi1>, vector<2x32xf32>
    %178 = vector.extract_strided_slice %5 {offsets = [10, 0], sizes = [2, 128], strides = [1, 1]} : vector<16x128xf32> to vector<2x128xf32>
    %cst_32 = arith.constant dense<0.000000e+00> : vector<2x128xf32>
    %179 = tpu.matmul %175, %6, %cst_32 {dimension_numbers = #tpu.dot_dimension_numbers<[1], [0], [0], [1], [0, 0, 1, 1], [], []>} : vector<2x32xf32>, vector<32x128xf32>, vector<2x128xf32> -> vector<2x128xf32>
    %180 = arith.addf %178, %179 : vector<2x128xf32>
    %181 = vector.extract_strided_slice %180 {offsets = [0, 0], sizes = [2, 32], strides = [1, 1]} : vector<2x128xf32> to vector<2x32xf32>
    %182 = arith.negf %181 : vector<2x32xf32>
    %183 = math.exp %182 : vector<2x32xf32>
    %cst_33 = arith.constant 1.000000e+00 : f32
    %184 = vector.broadcast %cst_33 : f32 to vector<2x32xf32>
    %185 = arith.addf %184, %183 : vector<2x32xf32>
    %186 = arith.divf %184, %185 : vector<2x32xf32>
    %187 = vector.extract_strided_slice %180 {offsets = [0, 32], sizes = [2, 32], strides = [1, 1]} : vector<2x128xf32> to vector<2x32xf32>
    %188 = arith.negf %187 : vector<2x32xf32>
    %189 = math.exp %188 : vector<2x32xf32>
    %cst_34 = arith.constant 1.000000e+00 : f32
    %190 = vector.broadcast %cst_34 : f32 to vector<2x32xf32>
    %191 = arith.addf %190, %189 : vector<2x32xf32>
    %192 = arith.divf %190, %191 : vector<2x32xf32>
    %193 = vector.extract_strided_slice %180 {offsets = [0, 64], sizes = [2, 32], strides = [1, 1]} : vector<2x128xf32> to vector<2x32xf32>
    %194 = math.tanh %193 : vector<2x32xf32>
    %195 = vector.extract_strided_slice %180 {offsets = [0, 96], sizes = [2, 32], strides = [1, 1]} : vector<2x128xf32> to vector<2x32xf32>
    %196 = arith.negf %195 : vector<2x32xf32>
    %197 = math.exp %196 : vector<2x32xf32>
    %cst_35 = arith.constant 1.000000e+00 : f32
    %198 = vector.broadcast %cst_35 : f32 to vector<2x32xf32>
    %199 = arith.addf %198, %197 : vector<2x32xf32>
    %200 = arith.divf %198, %199 : vector<2x32xf32>
    %201 = arith.mulf %192, %176 : vector<2x32xf32>
    %202 = arith.mulf %186, %194 : vector<2x32xf32>
    %203 = arith.addf %201, %202 : vector<2x32xf32>
    %204 = math.tanh %203 : vector<2x32xf32>
    %205 = arith.mulf %200, %204 : vector<2x32xf32>
    %c5_i32 = arith.constant 5 : i32
    %206 = vector.broadcast %c5_i32 : i32 to vector<2x32xi32>
    %207 = arith.cmpi sgt, %9, %206 : vector<2x32xi32>
    %208 = arith.select %207, %205, %175 : vector<2x32xi1>, vector<2x32xf32>
    %209 = arith.select %207, %203, %176 : vector<2x32xi1>, vector<2x32xf32>
    %210 = arith.select %207, %205, %12 : vector<2x32xi1>, vector<2x32xf32>
    %211 = vector.extract_strided_slice %5 {offsets = [12, 0], sizes = [2, 128], strides = [1, 1]} : vector<16x128xf32> to vector<2x128xf32>
    %cst_36 = arith.constant dense<0.000000e+00> : vector<2x128xf32>
    %212 = tpu.matmul %208, %6, %cst_36 {dimension_numbers = #tpu.dot_dimension_numbers<[1], [0], [0], [1], [0, 0, 1, 1], [], []>} : vector<2x32xf32>, vector<32x128xf32>, vector<2x128xf32> -> vector<2x128xf32>
    %213 = arith.addf %211, %212 : vector<2x128xf32>
    %214 = vector.extract_strided_slice %213 {offsets = [0, 0], sizes = [2, 32], strides = [1, 1]} : vector<2x128xf32> to vector<2x32xf32>
    %215 = arith.negf %214 : vector<2x32xf32>
    %216 = math.exp %215 : vector<2x32xf32>
    %cst_37 = arith.constant 1.000000e+00 : f32
    %217 = vector.broadcast %cst_37 : f32 to vector<2x32xf32>
    %218 = arith.addf %217, %216 : vector<2x32xf32>
    %219 = arith.divf %217, %218 : vector<2x32xf32>
    %220 = vector.extract_strided_slice %213 {offsets = [0, 32], sizes = [2, 32], strides = [1, 1]} : vector<2x128xf32> to vector<2x32xf32>
    %221 = arith.negf %220 : vector<2x32xf32>
    %222 = math.exp %221 : vector<2x32xf32>
    %cst_38 = arith.constant 1.000000e+00 : f32
    %223 = vector.broadcast %cst_38 : f32 to vector<2x32xf32>
    %224 = arith.addf %223, %222 : vector<2x32xf32>
    %225 = arith.divf %223, %224 : vector<2x32xf32>
    %226 = vector.extract_strided_slice %213 {offsets = [0, 64], sizes = [2, 32], strides = [1, 1]} : vector<2x128xf32> to vector<2x32xf32>
    %227 = math.tanh %226 : vector<2x32xf32>
    %228 = vector.extract_strided_slice %213 {offsets = [0, 96], sizes = [2, 32], strides = [1, 1]} : vector<2x128xf32> to vector<2x32xf32>
    %229 = arith.negf %228 : vector<2x32xf32>
    %230 = math.exp %229 : vector<2x32xf32>
    %cst_39 = arith.constant 1.000000e+00 : f32
    %231 = vector.broadcast %cst_39 : f32 to vector<2x32xf32>
    %232 = arith.addf %231, %230 : vector<2x32xf32>
    %233 = arith.divf %231, %232 : vector<2x32xf32>
    %234 = arith.mulf %225, %209 : vector<2x32xf32>
    %235 = arith.mulf %219, %227 : vector<2x32xf32>
    %236 = arith.addf %234, %235 : vector<2x32xf32>
    %237 = math.tanh %236 : vector<2x32xf32>
    %238 = arith.mulf %233, %237 : vector<2x32xf32>
    %c6_i32 = arith.constant 6 : i32
    %239 = vector.broadcast %c6_i32 : i32 to vector<2x32xi32>
    %240 = arith.cmpi sgt, %9, %239 : vector<2x32xi32>
    %241 = arith.select %240, %238, %208 : vector<2x32xi1>, vector<2x32xf32>
    %242 = arith.select %240, %236, %209 : vector<2x32xi1>, vector<2x32xf32>
    %243 = arith.select %240, %238, %12 : vector<2x32xi1>, vector<2x32xf32>
    %244 = vector.extract_strided_slice %5 {offsets = [14, 0], sizes = [2, 128], strides = [1, 1]} : vector<16x128xf32> to vector<2x128xf32>
    %cst_40 = arith.constant dense<0.000000e+00> : vector<2x128xf32>
    %245 = tpu.matmul %241, %6, %cst_40 {dimension_numbers = #tpu.dot_dimension_numbers<[1], [0], [0], [1], [0, 0, 1, 1], [], []>} : vector<2x32xf32>, vector<32x128xf32>, vector<2x128xf32> -> vector<2x128xf32>
    %246 = arith.addf %244, %245 : vector<2x128xf32>
    %247 = vector.extract_strided_slice %246 {offsets = [0, 0], sizes = [2, 32], strides = [1, 1]} : vector<2x128xf32> to vector<2x32xf32>
    %248 = arith.negf %247 : vector<2x32xf32>
    %249 = math.exp %248 : vector<2x32xf32>
    %cst_41 = arith.constant 1.000000e+00 : f32
    %250 = vector.broadcast %cst_41 : f32 to vector<2x32xf32>
    %251 = arith.addf %250, %249 : vector<2x32xf32>
    %252 = arith.divf %250, %251 : vector<2x32xf32>
    %253 = vector.extract_strided_slice %246 {offsets = [0, 32], sizes = [2, 32], strides = [1, 1]} : vector<2x128xf32> to vector<2x32xf32>
    %254 = arith.negf %253 : vector<2x32xf32>
    %255 = math.exp %254 : vector<2x32xf32>
    %cst_42 = arith.constant 1.000000e+00 : f32
    %256 = vector.broadcast %cst_42 : f32 to vector<2x32xf32>
    %257 = arith.addf %256, %255 : vector<2x32xf32>
    %258 = arith.divf %256, %257 : vector<2x32xf32>
    %259 = vector.extract_strided_slice %246 {offsets = [0, 64], sizes = [2, 32], strides = [1, 1]} : vector<2x128xf32> to vector<2x32xf32>
    %260 = math.tanh %259 : vector<2x32xf32>
    %261 = vector.extract_strided_slice %246 {offsets = [0, 96], sizes = [2, 32], strides = [1, 1]} : vector<2x128xf32> to vector<2x32xf32>
    %262 = arith.negf %261 : vector<2x32xf32>
    %263 = math.exp %262 : vector<2x32xf32>
    %cst_43 = arith.constant 1.000000e+00 : f32
    %264 = vector.broadcast %cst_43 : f32 to vector<2x32xf32>
    %265 = arith.addf %264, %263 : vector<2x32xf32>
    %266 = arith.divf %264, %265 : vector<2x32xf32>
    %267 = arith.mulf %258, %242 : vector<2x32xf32>
    %268 = arith.mulf %252, %260 : vector<2x32xf32>
    %269 = arith.addf %267, %268 : vector<2x32xf32>
    %270 = math.tanh %269 : vector<2x32xf32>
    %271 = arith.mulf %266, %270 : vector<2x32xf32>
    %c7_i32 = arith.constant 7 : i32
    %272 = vector.broadcast %c7_i32 : i32 to vector<2x32xi32>
    %273 = arith.cmpi sgt, %9, %272 : vector<2x32xi32>
    %274 = arith.select %273, %271, %12 : vector<2x32xi1>, vector<2x32xf32>
    %275 = tpu.concatenate %45, %78, %111, %144, %177, %210, %243, %274 in 1 : vector<2x32xf32>, vector<2x32xf32>, vector<2x32xf32>, vector<2x32xf32>, vector<2x32xf32>, vector<2x32xf32>, vector<2x32xf32>, vector<2x32xf32> -> vector<2x256xf32>
    %c0_44 = arith.constant 0 : index
    %c0_45 = arith.constant 0 : index
    %276 = vector.load %arg6[%c0_44, %c0_45] : memref<2x256xf32, #tpu.memory_space<vmem>>, vector<2x256xf32>
    tpu.vector_store %arg6[%c0_44, %c0_45], %275 {strides = array<i32>} : memref<2x256xf32, #tpu.memory_space<vmem>>, vector<2x256xf32>,
    return
  }
  func.func @transform_0(%arg0: i32) -> (i32, i32) {
    %c0_i32 = arith.constant 0 : i32
    %c0_i32_0 = arith.constant 0 : i32
    return %arg0, %c0_i32 : i32, i32
  }
  func.func @transform_1(%arg0: i32) -> (i32, i32) {
    %c0_i32 = arith.constant 0 : i32
    %c0_i32_0 = arith.constant 0 : i32
    return %arg0, %c0_i32 : i32, i32
  }
  func.func @transform_2(%arg0: i32) -> (i32, i32) {
    %c0_i32 = arith.constant 0 : i32
    %c0_i32_0 = arith.constant 0 : i32
    %c0_i32_1 = arith.constant 0 : i32
    return %c0_i32, %c0_i32_0 : i32, i32
  }
  func.func @transform_3(%arg0: i32) -> (i32, i32) {
    %c0_i32 = arith.constant 0 : i32
    %c0_i32_0 = arith.constant 0 : i32
    %c0_i32_1 = arith.constant 0 : i32
    return %c0_i32, %c0_i32_0 : i32, i32
  }
  func.func @transform_4(%arg0: i32) -> (i32, i32) {
    %c0_i32 = arith.constant 0 : i32
    %c0_i32_0 = arith.constant 0 : i32
    %c0_i32_1 = arith.constant 0 : i32
    return %c0_i32, %c0_i32_0 : i32, i32
  }
  func.func @transform_5(%arg0: i32) -> (i32, i32) {
    %c0_i32 = arith.constant 0 : i32
    %c0_i32_0 = arith.constant 0 : i32
    return %arg0, %c0_i32 : i32, i32
  }
}

</mosaic_0001>

<bundles_post_ra>
// kernel: bert_embedding_lstm_forward.1
= control target key start
LH: loop header
LB: loop body
LE: loop exit
PB: predicated region body
PF: predicated region fallthrough
CT: control target
= control target key end

     0   :  { %v1322_v0 = vmov 0.0   ;;  %vm1323_vm0 = vmmov 0   ;;  %vm51_vm1 = vcmask 261120   ;;  %v1324_v8 = vmov 0   ;;  %s1327_s8 = smov 96   ;;  %s1616_s2 = inlined_call_operand.vmem [shape: bf16[32,128], index: 2, kind: input, shape index: {}]   ;;  %s1617_s3 = inlined_call_operand.vmem [shape: f32[32,128], index: 3, kind: input, shape index: {}]   ;;  %s1618_s0 = inlined_call_operand.vmem [shape: bf16[16,32], index: 0, kind: input, shape index: {}]   ;;  %s1619_s1 = inlined_call_operand.vmem [shape: s32[2,1], index: 1, kind: input, shape index: {}]   ;;  %s1620_s4 = inlined_call_operand.vmem [shape: f32[1,128], index: 4, kind: input, shape index: {}]   ;;  %s1621_s5 = inlined_call_operand.vmem [shape: f32[2,256], index: 5, kind: output, shape index: {}]  }
   0x1   :  { %1151 = vmatprep.subr.bf16.mxu0 %v1322_v0  ;;  %1159 = vmatprep.subr.mxu1 %v1322_v0  ;;  %v1255_v1 = vld [vmem:[%s1616_s2 + $0x8] sm:$0xff]   ;;  %v1366_v2 = vld [vmem:[%s1617_s3 + $0x18] sm:$0xff]  ;;  %v1371_v3 = vld [vmem:[%s1617_s3 + $0x10] sm:$0xff]  ;;  %vm1064_vm10 = vcmask 523264   ;;  %vm1066_vm11 = vcmask 785408  }
   0x2   :  { %1155 = vmatprep.mubr.msk.bf16.mxu0 %vm1323_vm0, %v1322_v0  ;;  %1167 = vmatprep.mubr.msk.f32.mxu1 %vm1323_vm0, %v1322_v0  ;;  %v1256_v4 = vld [vmem:[%s1616_s2] sm:$0xff]   ;;  %v1386_v5 = vld [vmem:[%s1617_s3 + $0x8] sm:$0xff] }
   0x3   :  { %1152 = vmatpush3.bf16.msra.mxu0 %v1255_v1  ;;  %1160 = vmatpush3.msra.mxu1 %v1366_v2  ;;  %v1393_v6 = vld [vmem:[%s1617_s3] sm:$0xff] }
   0x4   :  { %1161 = vmatprep.subr.mxu1 %v1322_v0  ;;  %1153 = vmatprep.subr.bf16.mxu0 %v1322_v0  ;;  %v1257_v7 = vld [vmem:[%s1618_s0] sm:$0xff]  }
   0x5   :  { %1162 = vmatpush3.msra.mxu1 %v1371_v3  ;;  %1253 = vset.pattern.permute.xlu1 %v1324_v8  ;;  %v100_v9 = vld [vmem:[%s1619_s1] sm:$0x3]  ;;  %s1325_s1 = smov 64  }
   0x6   :  { %1163 = vmatprep.subr.mxu1 %v1322_v0  ;;  %1254 = vset.pattern.permute.xlu0 %v1324_v8  ;;  %v1087_v10 = vld [vmem:[%s1620_s4] ss:$0 sm:$0xff]  ;;  %s1326_s4 = smov 32  }
   0x7   :  { %1154 = vmatpush3.bf16.msra.mxu0 %v1256_v4  ;;  %1164 = vmatpush3.msra.mxu1 %v1386_v5 }
   0x8   :  { %1165 = vmatprep.subr.mxu1 %v1322_v0  ;;  %1170 = vmatprep.subr.mxu0 %v1322_v0 }
   0x9   :  { %1166 = vmatpush3.msra.mxu1 %v1393_v6  ;;  %102 = vperm.xlu1 %1253, %v100_v9  }
   0xa   :  { %1156 = vmatmul.mubr.msk.bf16.vlgmr.msra.gmra.mxu0 %vm51_vm1, %v1257_v7  ;;  %1168 = vmatmul.mubr.f32.vlgmr.msra.gmra.mxu1 %v1322_v0 }
   0xb   :  { %1171 = vmatpush3.msra.mxu0 %v1366_v2  ;;  %1178 = vmatprep.mubr.msk.f32.mxu0 %vm1323_vm0, %v1322_v0 }
   0xc   :  { %1172 = vmatprep.subr.mxu0 %v1322_v0  ;;  %1181 = vmatprep.subr.mxu1 %v1322_v0 }
   0xd   :  { %1173 = vmatpush3.msra.mxu0 %v1371_v3  ;;  %1182 = vmatpush3.msra.mxu1 %v1366_v2 }
   0xe   :  { %1174 = vmatprep.subr.mxu0 %v1322_v0  ;;  %1183 = vmatprep.subr.mxu1 %v1322_v0 }
   0xf   :  { %1175 = vmatpush3.msra.mxu0 %v1386_v5  ;;  %1184 = vmatpush3.msra.mxu1 %v1371_v3 }
  0x10   :  { %1176 = vmatprep.subr.mxu0 %v1322_v0  ;;  %1185 = vmatprep.subr.mxu1 %v1322_v0 }
  0x11   :  { %1177 = vmatpush3.msra.mxu0 %v1393_v6  ;;  %1186 = vmatpush3.msra.mxu1 %v1386_v5 }
  0x12   :  { %1187 = vmatprep.subr.mxu1 %v1322_v0  ;;  %1189 = vmatprep.mubr.msk.f32.mxu1 %vm1323_vm0, %v1322_v0 }
  0x13   :  { %1188 = vmatpush3.msra.mxu1 %v1393_v6  ;;  %1192 = vmatprep.subr.mxu0 %v1322_v0 }
  0x14   :  { %1203 = vmatprep.subr.mxu1 %v1322_v0 }
  0x84   :  { %v1439_v31 = vpop.permute.xlu1 %102 }
  0x85   :  { %vm202_vm2 = vcmp.gt.s32.totalorder %v1439_v31, 0  ;;  %vm311_vm3 = vcmp.gt.s32.totalorder %v1439_v31, 1  ;;  %vm435_vm4 = vcmp.gt.s32.totalorder %v1439_v31, 2  ;;  %vm555_vm5 = vcmp.gt.s32.totalorder %v1439_v31, 3 }
  0x86   :  { %vm671_vm6 = vcmp.gt.s32.totalorder %v1439_v31, 4  ;;  %vm784_vm7 = vcmp.gt.s32.totalorder %v1439_v31, 5  ;;  %vm908_vm8 = vcmp.gt.s32.totalorder %v1439_v31, 6  ;;  %vm1028_vm9 = vcmp.gt.s32.totalorder %v1439_v31, 7 }
  0xca   :  { %v89_v11 = vpop.f32.mrf.mxu0  ;;  %v173_v12 = vpop.f32.mrf.mxu1 }
  0xcb   :  { %v1431_v13 = vadd.f32 %v1087_v10, %v89_v11 }
  0xcc   :  { %v1157_v14 = vpop.f32.mrf.mxu0  ;;  %v1169_v15 = vpop.f32.mrf.mxu1 }
  0xcd   :  { %v177_v16 = vadd.f32 %v173_v12, %v1431_v13 }
  0xce   :  { %v92_v17 = vpop.f32.mrf.mxu0 }
  0xcf   :  { %1258 = vtanh.f32 %v177_v16  ;;  %v1434_v18 = vadd.f32 %v1087_v10, %v92_v17  ;;  %v1092_v21 = vmul.f32 -1.442695, %v177_v16 }
  0xd0   :  { %v1158_v19 = vpop.f32.mrf.mxu0 }
  0xd1   :  { %1260 = vpow2.f32 %v1092_v21 }
  0xdc   :  { %v1259_v20 = vpop.eup %1258 }
  0xdd   :  { %187 = vrot.lane.b32.xlu0 %v1259_v20, %s1325_s1 }
  0xde   :  { %v1261_v22 = vpop.eup %1260 }
  0xdf   :  { %v181_v23 = vadd.f32 1.0, %v1261_v22 }
  0xe1   :  { %1262 = vrcp.f32 %v181_v23 }
  0xee   :  { %v1263_v24 = vpop.eup %1262 }
  0xef   :  { %v185_v27 = vmul.f32 0.0, %v1263_v24 }
 0x14f   :  { %v188_v25 = vpop.permute.xlu0 %187 }
 0x150   :  { %v190_v26 = vmul.f32 %v1263_v24, %v188_v25 }
 0x152   :  { %192 = vrot.lane.b32.xlu0 %v190_v26, %s1326_s4 }
 0x1c4   :  { %v193_v28 = vpop.permute.xlu0 %192 }
 0x1c5   :  { %v195_v29 = vadd.f32 %v193_v28, %v185_v27 }
 0x1c7   :  { %1264 = vtanh.f32 %v195_v29  ;;  %v204_v47 = vsel %vm202_vm2, %v195_v29, 0.0 }
 0x1c8   :  { %v292_v48 = vrot.slane %v204_v47, 6 }
 0x1d4   :  { %v1265_v30 = vpop.eup %1264 }
 0x1d5   :  { %198 = vrot.lane.b32.xlu1 %v1265_v30, %s1325_s1 }
 0x247   :  { %v199_v32 = vpop.permute.xlu1 %198 }
 0x248   :  { %v201_v33 = vmul.f32 %v1263_v24, %v199_v32 }
 0x24a   :  { %v203_v34 = vsel %vm202_vm2, %v201_v33, 0.0 }
 0x24b   :  { %206 = vrot.lane.b32.xlu0 %v203_v34, %s1326_s4 }
 0x2bd   :  { %v1445_v35 = vpop.permute.xlu0 %206 }
 0x2be   :  { %1179 = vmatmul.mubr.msk.f32.vlgmr.msra.gmra.mxu0 %vm51_vm1, %v1445_v35 }
 0x2bf   :  { %1193 = vmatpush3.msra.mxu0 %v1366_v2  ;;  %1200 = vmatprep.mubr.msk.f32.mxu0 %vm1323_vm0, %v1322_v0 }
 0x2c0   :  { %1194 = vmatprep.subr.mxu0 %v1322_v0 }
 0x2c1   :  { %1195 = vmatpush3.msra.mxu0 %v1371_v3 }
 0x2c2   :  { %1196 = vmatprep.subr.mxu0 %v1322_v0 }
 0x2c3   :  { %1197 = vmatpush3.msra.mxu0 %v1386_v5 }
 0x2c4   :  { %1198 = vmatprep.subr.mxu0 %v1322_v0 }
 0x2c5   :  { %1199 = vmatpush3.msra.mxu0 %v1393_v6 }
 0x2c6   :  { %1214 = vmatprep.subr.mxu0 %v1322_v0 }
 0x37e   :  { %v276_v36 = vpop.f32.mrf.mxu0 }
 0x37f   :  { %v281_v37 = vrot.slane %v276_v36, 6 }
 0x380   :  { %v1180_v38 = vpop.f32.mrf.mxu0 }
 0x381   :  { %v283_v39 = vadd.f32 %v281_v37, %v1431_v13 }
 0x383   :  { %1266 = vtanh.f32 %v283_v39  ;;  %v1094_v41 = vmul.f32 -1.442695, %v283_v39 }
 0x385   :  { %1268 = vpow2.f32 %v1094_v41 }
 0x390   :  { %v1267_v40 = vpop.eup %1266 }
 0x391   :  { %296 = vrot.lane.b32.xlu1 %v1267_v40, %s1325_s1 }
 0x392   :  { %v1269_v42 = vpop.eup %1268 }
 0x393   :  { %v287_v43 = vadd.f32 1.0, %v1269_v42 }
 0x395   :  { %1270 = vrcp.f32 %v287_v43 }
 0x3a2   :  { %v1271_v44 = vpop.eup %1270 }
 0x3a3   :  { %v294_v49 = vmul.f32 %v1271_v44, %v292_v48 }
 0x403   :  { %v297_v45 = vpop.permute.xlu1 %296 }
 0x404   :  { %v299_v46 = vmul.f32 %v1271_v44, %v297_v45 }
 0x406   :  { %301 = vrot.lane.b32.xlu0 %v299_v46, %s1326_s4 }
 0x478   :  { %v302_v50 = vpop.permute.xlu0 %301 }
 0x479   :  { %v304_v51 = vadd.f32 %v302_v50, %v294_v49 }
 0x47b   :  { %1272 = vtanh.f32 %v304_v51  ;;  %v320_v53 = vrot.slane %v304_v51, 2 }
 0x488   :  { %v1273_v52 = vpop.eup %1272 }
 0x489   :  { %307 = vrot.lane.b32.xlu1 %v1273_v52, %s1325_s1 }
 0x48d   :  { %321 = vrot.lane.b32.xlu1 %v320_v53, %s1327_s8 }
 0x4fb   :  { %v308_v54 = vpop.permute.xlu1 %307 }
 0x4fc   :  { %v310_v55 = vmul.f32 %v1271_v44, %v308_v54 }
 0x4fe   :  { %v313_v56 = vrot.slane %v310_v55, 2 }
 0x4ff   :  { %v322_v60 = vpop.permute.xlu1 %321 }
 0x500   :  { %314 = vrot.lane.b32.xlu0 %v313_v56, %s1326_s4 }
 0x504   :  { %324 = vrot.lane.b32.xlu0 %v204_v47, %s1327_s8 }
 0x572   :  { %v315_v57 = vpop.permute.xlu0 %314 }
 0x573   :  { %v318_v58 = vsel %vm311_vm3, %v315_v57, %v1445_v35  ;;  %v1470_v59 = vsel %vm311_vm3, %v315_v57, 0.0 }
 0x574   :  { %1190 = vmatmul.mubr.msk.f32.vlgmr.msra.gmra.mxu1 %vm51_vm1, %v318_v58 }
 0x575   :  { %1204 = vmatpush3.msra.mxu1 %v1366_v2  ;;  %1211 = vmatprep.mubr.msk.f32.mxu1 %vm1323_vm0, %v1322_v0 }
 0x576   :  { %v325_v61 = vpop.permute.xlu0 %324  ;;  %1205 = vmatprep.subr.mxu1 %v1322_v0 }
 0x577   :  { %v327_v62 = vsel %vm311_vm3, %v322_v60, %v325_v61  ;;  %1206 = vmatpush3.msra.mxu1 %v1371_v3 }
 0x578   :  { %v414_v63 = vrot.slane %v327_v62, 4  ;;  %1207 = vmatprep.subr.mxu1 %v1322_v0 }
 0x579   :  { %1208 = vmatpush3.msra.mxu1 %v1386_v5 }
 0x57a   :  { %415 = vrot.lane.b32.xlu0 %v414_v63, %s1326_s4  ;;  %1209 = vmatprep.subr.mxu1 %v1322_v0 }
 0x57b   :  { %1210 = vmatpush3.msra.mxu1 %v1393_v6 }
 0x57c   :  { %1225 = vmatprep.subr.mxu1 %v1322_v0 }
 0x5ec   :  { %v416_v17 = vpop.permute.xlu0 %415 }
 0x634   :  { %v398_v1 = vpop.f32.mrf.mxu1 }
 0x635   :  { %v403_v4 = vrot.slane %v398_v1, 4 }
 0x636   :  { %v1191_v7 = vpop.f32.mrf.mxu1 }
 0x637   :  { %v405_v8 = vadd.f32 %v403_v4, %v1431_v13 }
 0x639   :  { %1274 = vtanh.f32 %v405_v8  ;;  %v1096_v10 = vmul.f32 -1.442695, %v405_v8 }
 0x63b   :  { %1276 = vpow2.f32 %v1096_v10 }
 0x646   :  { %v1275_v9 = vpop.eup %1274 }
 0x647   :  { %420 = vrot.lane.b32.xlu1 %v1275_v9, %s1325_s1 }
 0x648   :  { %v1277_v11 = vpop.eup %1276 }
 0x649   :  { %v409_v12 = vadd.f32 1.0, %v1277_v11 }
 0x64b   :  { %1278 = vrcp.f32 %v409_v12 }
 0x658   :  { %v1279_v14 = vpop.eup %1278 }
 0x659   :  { %v418_v19 = vmul.f32 %v1279_v14, %v416_v17 }
 0x6b9   :  { %v421_v15 = vpop.permute.xlu1 %420 }
 0x6ba   :  { %v423_v16 = vmul.f32 %v1279_v14, %v421_v15 }
 0x6bc   :  { %425 = vrot.lane.b32.xlu1 %v423_v16, %s1326_s4 }
 0x72e   :  { %v426_v20 = vpop.permute.xlu1 %425 }
 0x72f   :  { %v428_v21 = vadd.f32 %v426_v20, %v418_v19 }
 0x731   :  { %1280 = vtanh.f32 %v428_v21  ;;  %v443_v23 = vrot.slane %v428_v21, 4 }
 0x73e   :  { %v1281_v22 = vpop.eup %1280 }
 0x73f   :  { %431 = vrot.lane.b32.xlu0 %v1281_v22, %s1325_s1 }
 0x743   :  { %444 = vrot.lane.b32.xlu0 %v443_v23, %s1327_s8 }
 0x7b1   :  { %v432_v24 = vpop.permute.xlu0 %431 }
 0x7b2   :  { %v434_v25 = vmul.f32 %v1279_v14, %v432_v24 }
 0x7b4   :  { %v437_v26 = vrot.slane %v434_v25, 4 }
 0x7b5   :  { %v445_v27 = vpop.permute.xlu0 %444 }
 0x7b6   :  { %v447_v28 = vsel %vm435_vm4, %v445_v27, %v327_v62  ;;  %438 = vrot.lane.b32.xlu1 %v437_v26, %s1326_s4 }
 0x7b7   :  { %v534_v29 = vrot.slane %v447_v28, 2 }
 0x7b9   :  { %535 = vrot.lane.b32.xlu0 %v534_v29, %s1326_s4 }
 0x828   :  { %v1494_v30 = vpop.permute.xlu1 %438 }
 0x829   :  { %v441_v32 = vsel %vm435_vm4, %v1494_v30, %v318_v58 }
 0x82a   :  { %1201 = vmatmul.mubr.msk.f32.vlgmr.msra.gmra.mxu0 %vm51_vm1, %v441_v32 }
 0x82b   :  { %1215 = vmatpush3.msra.mxu0 %v1366_v2  ;;  %1222 = vmatprep.mubr.msk.f32.mxu0 %vm1323_vm0, %v1322_v0  ;;  %v536_v45 = vpop.permute.xlu0 %535 }
 0x82c   :  { %1216 = vmatprep.subr.mxu0 %v1322_v0 }
 0x82d   :  { %1217 = vmatpush3.msra.mxu0 %v1371_v3 }
 0x82e   :  { %1218 = vmatprep.subr.mxu0 %v1322_v0 }
 0x82f   :  { %1219 = vmatpush3.msra.mxu0 %v1386_v5 }
 0x830   :  { %1220 = vmatprep.subr.mxu0 %v1322_v0 }
 0x831   :  { %1221 = vmatpush3.msra.mxu0 %v1393_v6 }
 0x832   :  { %1236 = vmatprep.subr.mxu0 %v1322_v0 }
 0x8ea   :  { %v518_v33 = vpop.f32.mrf.mxu0 }
 0x8eb   :  { %v523_v34 = vrot.slane %v518_v33, 2 }
 0x8ec   :  { %v1202_v36 = vpop.f32.mrf.mxu0 }
 0x8ed   :  { %v525_v37 = vadd.f32 %v523_v34, %v1431_v13 }
 0x8ef   :  { %1282 = vtanh.f32 %v525_v37  ;;  %v1098_v39 = vmul.f32 -1.442695, %v525_v37 }
 0x8f1   :  { %1284 = vpow2.f32 %v1098_v39 }
 0x8fc   :  { %v1283_v38 = vpop.eup %1282 }
 0x8fd   :  { %540 = vrot.lane.b32.xlu1 %v1283_v38, %s1325_s1 }
 0x8fe   :  { %v1285_v40 = vpop.eup %1284 }
 0x8ff   :  { %v529_v41 = vadd.f32 1.0, %v1285_v40 }
 0x901   :  { %1286 = vrcp.f32 %v529_v41 }
 0x90e   :  { %v1287_v42 = vpop.eup %1286 }
 0x90f   :  { %v538_v46 = vmul.f32 %v1287_v42, %v536_v45 }
 0x96f   :  { %v541_v43 = vpop.permute.xlu1 %540 }
 0x970   :  { %v543_v44 = vmul.f32 %v1287_v42, %v541_v43 }
 0x972   :  { %545 = vrot.lane.b32.xlu1 %v543_v44, %s1326_s4 }
 0x9e4   :  { %v546_v47 = vpop.permute.xlu1 %545 }
 0x9e5   :  { %v548_v48 = vadd.f32 %v546_v47, %v538_v46 }
 0x9e7   :  { %1288 = vtanh.f32 %v548_v48  ;;  %v563_v49 = vrot.slane %v548_v48, 6 }
 0x9f4   :  { %v1289_v13 = vpop.eup %1288 }
 0x9f5   :  { %551 = vrot.lane.b32.xlu0 %v1289_v13, %s1325_s1 }
 0x9f9   :  { %564 = vrot.lane.b32.xlu0 %v563_v49, %s1327_s8 }
 0xa67   :  { %v552_v50 = vpop.permute.xlu0 %551 }
 0xa68   :  { %v554_v51 = vmul.f32 %v1287_v42, %v552_v50 }
 0xa6a   :  { %v557_v52 = vrot.slane %v554_v51, 6 }
 0xa6b   :  { %v565_v53 = vpop.permute.xlu0 %564 }
 0xa6c   :  { %558 = vrot.lane.b32.xlu1 %v557_v52, %s1326_s4  ;;  %v567_v54 = vsel %vm555_vm5, %v565_v53, %v447_v28 }
 0xa6d   :  { %651 = vrot.lane.b32.xlu0 %v567_v54, %s1326_s4 }
 0xade   :  { %v1520_v55 = vpop.permute.xlu1 %558 }
 0xadf   :  { %v561_v56 = vsel %vm555_vm5, %v1520_v55, %v441_v32  ;;  %v652_v9 = vpop.permute.xlu0 %651 }
 0xae0   :  { %1212 = vmatmul.mubr.msk.f32.vlgmr.msra.gmra.mxu1 %vm51_vm1, %v561_v56 }
 0xae1   :  { %1226 = vmatpush3.msra.mxu1 %v1366_v2  ;;  %1233 = vmatprep.mubr.msk.f32.mxu1 %vm1323_vm0, %v1322_v0 }
 0xae2   :  { %1227 = vmatprep.subr.mxu1 %v1322_v0 }
 0xae3   :  { %1228 = vmatpush3.msra.mxu1 %v1371_v3 }
 0xae4   :  { %1229 = vmatprep.subr.mxu1 %v1322_v0 }
 0xae5   :  { %1230 = vmatpush3.msra.mxu1 %v1386_v5 }
 0xae6   :  { %1231 = vmatprep.subr.mxu1 %v1322_v0 }
 0xae7   :  { %1232 = vmatpush3.msra.mxu1 %v1393_v6 }
 0xba0   :  { %v638_v57 = vpop.f32.mrf.mxu1 }
 0xba1   :  { %v642_v58 = vadd.f32 %v638_v57, %v1434_v18 }
 0xba2   :  { %v1213_v60 = vpop.f32.mrf.mxu1 }
 0xba3   :  { %1290 = vtanh.f32 %v642_v58  ;;  %v1100_v62 = vmul.f32 -1.442695, %v642_v58 }
 0xba5   :  { %1292 = vpow2.f32 %v1100_v62 }
 0xbb0   :  { %v1291_v61 = vpop.eup %1290 }
 0xbb1   :  { %656 = vrot.lane.b32.xlu1 %v1291_v61, %s1325_s1 }
 0xbb2   :  { %v1293_v63 = vpop.eup %1292 }
 0xbb3   :  { %v646_v1 = vadd.f32 1.0, %v1293_v63 }
 0xbb5   :  { %1294 = vrcp.f32 %v646_v1 }
 0xbc2   :  { %v1295_v4 = vpop.eup %1294 }
 0xbc3   :  { %v654_v10 = vmul.f32 %v1295_v4, %v652_v9 }
 0xc23   :  { %v657_v7 = vpop.permute.xlu1 %656 }
 0xc24   :  { %v659_v8 = vmul.f32 %v1295_v4, %v657_v7 }
 0xc26   :  { %661 = vrot.lane.b32.xlu1 %v659_v8, %s1326_s4 }
 0xc2a   :  { %672 = vrot.lane.b32.xlu1 %v561_v56, %s1327_s8 }
 0xc98   :  { %v662_v11 = vpop.permute.xlu1 %661 }
 0xc99   :  { %v664_v12 = vadd.f32 %v662_v11, %v654_v10 }
 0xc9b   :  { %1296 = vtanh.f32 %v664_v12 }
 0xc9c   :  { %v673_v17 = vpop.permute.xlu1 %672 }
 0xca8   :  { %v1297_v14 = vpop.eup %1296 }
 0xca9   :  { %667 = vrot.lane.b32.xlu0 %v1297_v14, %s1325_s1 }
 0xd1b   :  { %v668_v15 = vpop.permute.xlu0 %667 }
 0xd1c   :  { %v1540_v16 = vmul.f32 %v1295_v4, %v668_v15 }
 0xd1e   :  { %v675_v19 = vsel %vm671_vm6, %v1540_v16, %v673_v17 }
 0xd1f   :  { %679 = vrot.lane.b32.xlu0 %v675_v19, %s1326_s4 }
 0xd91   :  { %v680_v20 = vpop.permute.xlu0 %679 }
 0xd92   :  { %1223 = vmatmul.mubr.msk.f32.vlgmr.msra.gmra.mxu0 %vm51_vm1, %v680_v20 }
 0xd93   :  { %1237 = vmatpush3.msra.mxu0 %v1366_v2  ;;  %1244 = vmatprep.mubr.msk.f32.mxu0 %vm1323_vm0, %v1322_v0 }
 0xd94   :  { %1238 = vmatprep.subr.mxu0 %v1322_v0 }
 0xd95   :  { %1239 = vmatpush3.msra.mxu0 %v1371_v3 }
 0xd96   :  { %1240 = vmatprep.subr.mxu0 %v1322_v0 }
 0xd97   :  { %1241 = vmatpush3.msra.mxu0 %v1386_v5 }
 0xd98   :  { %1242 = vmatprep.subr.mxu0 %v1322_v0  ;;  %v676_v0 = vsel %vm671_vm6, %v664_v12, %v652_v9 }
 0xd99   :  { %1243 = vmatpush3.msra.mxu0 %v1393_v6  ;;  %v765_v6 = vrot.slane %v676_v0, 6 }
 0xe52   :  { %v749_v21 = vpop.f32.mrf.mxu0 }
 0xe53   :  { %v754_v22 = vrot.slane %v749_v21, 6 }
 0xe54   :  { %v1224_v23 = vpop.f32.mrf.mxu0 }
 0xe55   :  { %v756_v2 = vadd.f32 %v754_v22, %v1434_v18 }
 0xe57   :  { %1298 = vtanh.f32 %v756_v2  ;;  %v1102_v25 = vmul.f32 -1.442695, %v756_v2 }
 0xe59   :  { %1300 = vpow2.f32 %v1102_v25 }
 0xe64   :  { %v1299_v24 = vpop.eup %1298 }
 0xe65   :  { %769 = vrot.lane.b32.xlu1 %v1299_v24, %s1325_s1 }
 0xe66   :  { %v1301_v3 = vpop.eup %1300 }
 0xe67   :  { %v760_v26 = vadd.f32 1.0, %v1301_v3 }
 0xe69   :  { %1302 = vrcp.f32 %v760_v26 }
 0xe76   :  { %v1303_v27 = vpop.eup %1302 }
 0xe77   :  { %v767_v29 = vmul.f32 %v1303_v27, %v765_v6 }
 0xed7   :  { %v770_v5 = vpop.permute.xlu1 %769 }
 0xed8   :  { %v772_v28 = vmul.f32 %v1303_v27, %v770_v5 }
 0xeda   :  { %774 = vrot.lane.b32.xlu0 %v772_v28, %s1326_s4 }
 0xf4c   :  { %v775_v32 = vpop.permute.xlu0 %774 }
 0xf4d   :  { %v777_v33 = vadd.f32 %v775_v32, %v767_v29 }
 0xf4f   :  { %1304 = vtanh.f32 %v777_v33  ;;  %v793_v36 = vrot.slane %v777_v33, 2  ;;  %v677_v33 = vsel %vm671_vm6, %v1540_v16, 0.0 }
 0xf5c   :  { %v1305_v34 = vpop.eup %1304 }
 0xf5d   :  { %780 = vrot.lane.b32.xlu1 %v1305_v34, %s1325_s1  ;;  %v568_v34 = vsel %vm555_vm5, %v1520_v55, 0.0 }
 0xf61   :  { %794 = vrot.lane.b32.xlu1 %v793_v36, %s1327_s8 }
 0xfcf   :  { %v781_v37 = vpop.permute.xlu1 %780 }
 0xfd0   :  { %v783_v38 = vmul.f32 %v1303_v27, %v781_v37 }
 0xfd2   :  { %v786_v39 = vrot.slane %v783_v38, 2 }
 0xfd3   :  { %v795_v43 = vpop.permute.xlu1 %794 }
 0xfd4   :  { %787 = vrot.lane.b32.xlu0 %v786_v39, %s1326_s4 }
 0xfd8   :  { %797 = vrot.lane.b32.xlu0 %v676_v0, %s1327_s8 }
0x1046   :  { %v788_v40 = vpop.permute.xlu0 %787 }
0x1047   :  { %v791_v41 = vsel %vm784_vm7, %v788_v40, %v680_v20  ;;  %v1567_v42 = vsel %vm784_vm7, %v788_v40, 0.0 }
0x1048   :  { %1234 = vmatmul.mubr.msk.f32.vlgmr.msra.gmra.mxu1 %vm51_vm1, %v791_v41 }
0x104a   :  { %v798_v44 = vpop.permute.xlu0 %797 }
0x104b   :  { %v800_v45 = vsel %vm784_vm7, %v795_v43, %v798_v44 }
0x104c   :  { %v887_v46 = vrot.slane %v800_v45, 4 }
0x104e   :  { %888 = vrot.lane.b32.xlu0 %v887_v46, %s1326_s4 }
0x10c0   :  { %v889_v58 = vpop.permute.xlu0 %888 }
0x1108   :  { %v871_v47 = vpop.f32.mrf.mxu1 }
0x1109   :  { %v876_v48 = vrot.slane %v871_v47, 4 }
0x110a   :  { %v1235_v13 = vpop.f32.mrf.mxu1 }
0x110b   :  { %v878_v49 = vadd.f32 %v876_v48, %v1434_v18 }
0x110d   :  { %1306 = vtanh.f32 %v878_v49  ;;  %v1104_v51 = vmul.f32 -1.442695, %v878_v49 }
0x110f   :  { %1308 = vpow2.f32 %v1104_v51 }
0x111a   :  { %v1307_v50 = vpop.eup %1306 }
0x111b   :  { %893 = vrot.lane.b32.xlu1 %v1307_v50, %s1325_s1 }
0x111c   :  { %v1309_v52 = vpop.eup %1308 }
0x111d   :  { %v882_v53 = vadd.f32 1.0, %v1309_v52 }
0x111f   :  { %1310 = vrcp.f32 %v882_v53 }
0x112c   :  { %v1311_v54 = vpop.eup %1310 }
0x112d   :  { %v891_v60 = vmul.f32 %v1311_v54, %v889_v58 }
0x118d   :  { %v894_v56 = vpop.permute.xlu1 %893 }
0x118e   :  { %v896_v57 = vmul.f32 %v1311_v54, %v894_v56 }
0x1190   :  { %898 = vrot.lane.b32.xlu1 %v896_v57, %s1326_s4 }
0x1202   :  { %v899_v61 = vpop.permute.xlu1 %898 }
0x1203   :  { %v901_v62 = vadd.f32 %v899_v61, %v891_v60 }
0x1205   :  { %1312 = vtanh.f32 %v901_v62  ;;  %v916_v1 = vrot.slane %v901_v62, 4 }
0x1212   :  { %v1313_v63 = vpop.eup %1312 }
0x1213   :  { %904 = vrot.lane.b32.xlu0 %v1313_v63, %s1325_s1 }
0x1217   :  { %917 = vrot.lane.b32.xlu0 %v916_v1, %s1327_s8 }
0x1285   :  { %v905_v4 = vpop.permute.xlu0 %904 }
0x1286   :  { %v907_v7 = vmul.f32 %v1311_v54, %v905_v4 }
0x1288   :  { %v910_v8 = vrot.slane %v907_v7, 4 }
0x1289   :  { %v918_v9 = vpop.permute.xlu0 %917 }
0x128a   :  { %v920_v10 = vsel %vm908_vm8, %v918_v9, %v800_v45  ;;  %911 = vrot.lane.b32.xlu1 %v910_v8, %s1326_s4 }
0x128b   :  { %v1007_v11 = vrot.slane %v920_v10, 2 }
0x128d   :  { %1008 = vrot.lane.b32.xlu0 %v1007_v11, %s1326_s4 }
0x12fc   :  { %v912_v12 = vpop.permute.xlu1 %911 }
0x12fd   :  { %v914_v14 = vsel %vm908_vm8, %v912_v12, %v791_v41  ;;  %v921_v0 = vsel %vm908_vm8, %v912_v12, 0.0 }
0x12fe   :  { %1245 = vmatmul.mubr.msk.f32.vlgmr.msra.gmra.mxu0 %vm51_vm1, %v914_v14 }
0x12ff   :  { %v1009_v26 = vpop.permute.xlu0 %1008 }
0x13be   :  { %v991_v15 = vpop.f32.mrf.mxu0 }
0x13bf   :  { %v996_v17 = vrot.slane %v991_v15, 2 }
0x13c0   :  { %v1246_v19 = vpop.f32.mrf.mxu0 }
0x13c1   :  { %v998_v20 = vadd.f32 %v996_v17, %v1434_v18 }
0x13c3   :  { %1314 = vtanh.f32 %v998_v20  ;;  %v1106_v22 = vmul.f32 -1.442695, %v998_v20 }
0x13c5   :  { %1316 = vpow2.f32 %v1106_v22 }
0x13d0   :  { %v1315_v21 = vpop.eup %1314 }
0x13d1   :  { %1013 = vrot.lane.b32.xlu1 %v1315_v21, %s1325_s1 }
0x13d2   :  { %v1317_v23 = vpop.eup %1316 }
0x13d3   :  { %v1002_v2 = vadd.f32 1.0, %v1317_v23 }
0x13d5   :  { %1318 = vrcp.f32 %v1002_v2 }
0x13e2   :  { %v1319_v24 = vpop.eup %1318 }
0x13e3   :  { %v1011_v27 = vmul.f32 %v1319_v24, %v1009_v26 }
0x1443   :  { %v1014_v25 = vpop.permute.xlu1 %1013 }
0x1444   :  { %v1016_v3 = vmul.f32 %v1319_v24, %v1014_v25 }
0x1446   :  { %1018 = vrot.lane.b32.xlu1 %v1016_v3, %s1326_s4 }
0x14b8   :  { %v1019_v5 = vpop.permute.xlu1 %1018 }
0x14b9   :  { %v1021_v28 = vadd.f32 %v1019_v5, %v1011_v27 }
0x14bb   :  { %1320 = vtanh.f32 %v1021_v28 }
0x14c8   :  { %v1321_v18 = vpop.eup %1320 }
0x14c9   :  { %1024 = vrot.lane.b32.xlu0 %v1321_v18, %s1325_s1 }
0x14cd   :  { %1036 = vrot.lane.b32.xlu0 %v1470_v59, %s1326_s4  ;;  %v448_v59 = vsel %vm435_vm4, %v1494_v30, 0.0 }
0x14d1   :  { %1052 = vrot.lane.b32.xlu0 %v1567_v42, %s1326_s4 }
0x14d5   :  { %1056 = vrot.lane.b32.xlu0 %v921_v0, %s1325_s1 }
0x153b   :  { %v1025_v6 = vpop.permute.xlu0 %1024 }
0x153c   :  { %v1027_v29 = vmul.f32 %v1319_v24, %v1025_v6 }
0x153e   :  { %v1030_v32 = vrot.slane %v1027_v29, 6 }
0x153f   :  { %v1037_v16 = vpop.permute.xlu0 %1036 }
0x1540   :  { %1031 = vrot.lane.b32.xlu1 %v1030_v32, %s1326_s4  ;;  %v1063_v55 = vsel %vm51_vm1, %v1445_v35, %v1037_v16 }
0x1543   :  { %v1053_v39 = vpop.permute.xlu0 %1052 }
0x1544   :  { %1048 = vrot.lane.b32.xlu1 %v677_v33, %s1326_s4 }
0x1547   :  { %v1057_v41 = vpop.permute.xlu0 %1056 }
0x1548   :  { %1040 = vrot.lane.b32.xlu1 %v448_v59, %s1325_s1 }
0x154c   :  { %1044 = vrot.lane.b32.xlu1 %v568_v34, %s1327_s8 }
0x15b2   :  { %v1032_v36 = vpop.permute.xlu1 %1031 }
0x15b3   :  { %v1034_v37 = vsel %vm1028_vm9, %v1032_v36, 0.0 }
0x15b4   :  { %1060 = vrot.lane.b32.xlu0 %v1034_v37, %s1327_s8 }
0x15b6   :  { %v1049_v38 = vpop.permute.xlu1 %1048 }
0x15b7   :  { %v1068_v30 = vsel %vm51_vm1, %v1049_v38, %v1053_v39 }
0x15b8   :  { %v1069_v44 = vsel %vm1064_vm10, %v1068_v30, %v1057_v41 }
0x15ba   :  { %v1041_v40 = vpop.permute.xlu1 %1040 }
0x15bb   :  { %v1065_v43 = vsel %vm1064_vm10, %v1063_v55, %v1041_v40 }
0x15be   :  { %v1045_v42 = vpop.permute.xlu1 %1044 }
0x15bf   :  { %v1067_v45 = vsel %vm1066_vm11, %v1065_v43, %v1045_v42 }
0x1626   :  { %v1061_v31 = vpop.permute.xlu0 %1060 }
0x1627   :  { %v1070_v46 = vsel %vm1066_vm11, %v1069_v44, %v1061_v31 }
0x1628   :  { %v1073_v47 = vcombine.low %v1067_v45, %v1070_v46 }
0x162a   :  { %1107 = vst.sshfl [vmem:[%s1621_s5] sm:$0x33 pattern:$0x76325410] %v1073_v47 }

</bundles_post_ra>
